<compile_context>
chip_gen: v5e
topology: v5e:2x2
jax: 0.10.0
libtpu: 0.0.40
codegen_flags: <defaults>
</compile_context>

<pallas_src>
import jax
import jax.numpy as jnp
from jax.experimental import pallas as pl
from jax.experimental.pallas import tpu as pltpu


LANE = 128      # lane width / hidden-dim alignment
NOUT = 2        # real output columns of fc_last
NOUT_PAD = 8    # stored output width (full-array-dim exception; narrow writeback)


def _round_up(n, m):
    return ((n + m - 1) // m) * m


def _vmem_capacity_bytes():
    try:
        info = pltpu.get_tpu_info()
        cap = getattr(info, "vmem_capacity_bytes", None)
        if cap:
            return int(cap)
    except Exception:
        pass
    return 64 * 1024 * 1024  # conservative (v7x per-TC)


def _choose_tile_b(B, max_tile_b):
    """Pick a batch tile: divides B when possible (no pad copy), >=2 tiles if B>8."""
    if B <= 8:
        return 8
    if B % 8 == 0:
        best = None
        upper = min(max_tile_b, B // 2)
        for t in range(8, upper + 1, 8):
            if B % t == 0:
                best = t
        if best is not None:
            return best
    # Fallback: ~2 equal tiles (last tile may be padded).
    return min(max_tile_b, _round_up((B + 1) // 2, 8))


def _mlp_kernel(x_ref, w1_ref, b1_ref, w2_ref, b2_ref, w3_ref, b3_ref, o_ref):
    # fc1 + ReLU
    h1 = jnp.dot(x_ref[...], w1_ref[...], preferred_element_type=jnp.float32)
    h1 = jnp.maximum(h1 + b1_ref[...], 0.0)
    # fc2 + ReLU
    h2 = jnp.dot(h1, w2_ref[...], preferred_element_type=jnp.float32)
    h2 = jnp.maximum(h2 + b2_ref[...], 0.0)
    # fc_last (no activation); narrow (tile_b, 8) slab, real logits in cols 0:2
    out = jnp.dot(h2, w3_ref[...], preferred_element_type=jnp.float32) + b3_ref[...]
    o_ref[...] = out.astype(o_ref.dtype)


def prepare_params(params):
    """One-time zero-padding of parameters (hoisted out of the forward path).

    params: dict with w1 [D,3D], b1 [3D], w2 [3D,3D], b2 [3D], w3 [3D,2], b3 [2]
            (weights stored [in, out], i.e. transposed from PyTorch's [out, in]).
    Padding is exact: ReLU(0)=0 and zero rows/cols contribute nothing.
    """
    D, H = params["w1"].shape
    Hp = _round_up(H, LANE)
    w1 = jnp.zeros((D, Hp), jnp.float32).at[:, :H].set(params["w1"])
    b1 = jnp.zeros((1, Hp), jnp.float32).at[0, :H].set(params["b1"])
    w2 = jnp.zeros((Hp, Hp), jnp.float32).at[:H, :H].set(params["w2"])
    b2 = jnp.zeros((1, Hp), jnp.float32).at[0, :H].set(params["b2"])
    w3 = jnp.zeros((Hp, NOUT_PAD), jnp.float32).at[:H, :NOUT].set(params["w3"])
    b3 = jnp.zeros((1, NOUT_PAD), jnp.float32).at[0, :NOUT].set(params["b3"])
    return {"w1": w1, "b1": b1, "w2": w2, "b2": b2, "w3": w3, "b3": b3}


def mediator_net_forward(x, padded_params, *, max_tile_b=1024):
    """Fused MediatorNet forward. x: [B, D] f32, padded_params from prepare_params."""
    B, D = x.shape
    w1 = padded_params["w1"]
    b1 = padded_params["b1"]
    w2 = padded_params["w2"]
    b2 = padded_params["b2"]
    w3 = padded_params["w3"]
    b3 = padded_params["b3"]
    Hp = w1.shape[1]
    Np = w3.shape[1]  # = NOUT_PAD

    # --- batch tiling (divisor of B when possible -> no padded activation copy)
    tile_b = _choose_tile_b(B, max_tile_b)
    Bp = _round_up(B, tile_b)
    if Bp != B:
        x = jnp.zeros((Bp, D), x.dtype).at[:B].set(x)
    grid = (Bp // tile_b,)

    # --- VMEM: x/out tiles double-buffered, weights/biases single-buffered (resident)
    footprint = 4 * (
        2 * tile_b * D
        + (D * Hp + Hp + Hp * Hp + Hp + Hp * Np + Np)
        + 2 * tile_b * Np
    )
    cap = int(_vmem_capacity_bytes() * 0.8)
    vmem_limit = int(min(cap, max(32 * 1024 * 1024, footprint + 4 * 1024 * 1024)))

    cost = pl.CostEstimate(
        flops=2 * Bp * (D * Hp + Hp * Hp + Hp * NOUT),
        transcendentals=0,
        bytes_accessed=4 * (Bp * D + D * Hp + Hp + Hp * Hp + Hp + Hp * Np + Np + Bp * Np),
    )

    def _resident(shape):
        # Grid-invariant operand: single buffer, fetched once.
        return pl.BlockSpec(shape, lambda i: (0, 0), pipeline_mode=pl.Buffered(1))

    out_padded = pl.pallas_call(
        _mlp_kernel,
        out_shape=jax.ShapeDtypeStruct((Bp, Np), jnp.float32),
        grid_spec=pltpu.PrefetchScalarGridSpec(
            num_scalar_prefetch=0,
            grid=grid,
            in_specs=[
                pl.BlockSpec((tile_b, D), lambda i: (i, 0)),  # x tile (pipelined)
                _resident((D, Hp)),                           # w1
                _resident((1, Hp)),                           # b1
                _resident((Hp, Hp)),                          # w2
                _resident((1, Hp)),                           # b2
                _resident((Hp, Np)),                          # w3 (8-wide)
                _resident((1, Np)),                           # b3
            ],
            out_specs=pl.BlockSpec((tile_b, Np), lambda i: (i, 0)),
        ),
        compiler_params=pltpu.CompilerParams(
            dimension_semantics=("parallel",),
            vmem_limit_bytes=vmem_limit,
        ),
        cost_estimate=cost,
    )(x, w1, b1, w2, b2, w3, b3)

    # Strip batch padding and the lane padding of the 2-wide logits.
    return out_padded[:B, :NOUT]


def init_params(key, input_dim):
    """Deterministic init matching PyTorch Linear shapes (weights stored as [in, out])."""
    D = input_dim
    H = 3 * D
    ks = jax.random.split(key, 6)

    def lin(kw, kb, fan_in, fan_out):
        bound = 1.0 / jnp.sqrt(fan_in)
        w = jax.random.uniform(kw, (fan_in, fan_out), jnp.float32, -bound, bound)
        b = jax.random.uniform(kb, (fan_out,), jnp.float32, -bound, bound)
        return w, b

    w1, b1 = lin(ks[0], ks[1], D, H)
    w2, b2 = lin(ks[2], ks[3], H, H)
    w3, b3 = lin(ks[4], ks[5], H, 2)
    return {"w1": w1, "b1": b1, "w2": w2, "b2": b2, "w3": w3, "b3": b3}


def reference_forward(x, p):
    h = jnp.maximum(x @ p["w1"] + p["b1"], 0.0)
    h = jnp.maximum(h @ p["w2"] + p["b2"], 0.0)
    return h @ p["w3"] + p["b3"]


if __name__ == "__main__":
    key = jax.random.PRNGKey(0)
    k_x, k_p = jax.random.split(key)

    B, D = 16, 32            # batch=16, input_dim=32 -> hidden=96 (padded to 128), output=2
    x = jax.random.normal(k_x, (B, D), dtype=jnp.float32)
    params = init_params(k_p, D)

    padded = prepare_params(params)          # one-time padding, hoisted out of forward
    out = mediator_net_forward(x, padded)
    out = jax.block_until_ready(out)

    ref = reference_forward(x, params)
    assert out.shape == (B, 2)
    assert jnp.allclose(out, ref, atol=1e-4, rtol=1e-4), "mismatch vs JAX reference"

    print("KERNEL_OK")
</pallas_src>

<mosaic_0001>
module attributes {stable_mosaic.version = 11 : i64} {
  func.func @_mlp_kernel(%arg0: i32, %arg1: memref<8x32xf32, #tpu.memory_space<vmem>>, %arg2: memref<32x128xf32, #tpu.memory_space<vmem>>, %arg3: memref<1x128xf32, #tpu.memory_space<vmem>>, %arg4: memref<128x128xf32, #tpu.memory_space<vmem>>, %arg5: memref<1x128xf32, #tpu.memory_space<vmem>>, %arg6: memref<128x8xf32, #tpu.memory_space<vmem>>, %arg7: memref<1x8xf32, #tpu.memory_space<vmem>>, %arg8: memref<8x8xf32, #tpu.memory_space<vmem>>) attributes {dimension_semantics = [#tpu.dimension_semantics<parallel>], iteration_bounds = array<i64: 2>, scalar_prefetch = 0 : i64, scratch_operands = 0 : i64, tpu.core_type = #tpu.core_type<tc>, window_params = [{transform_indices = @transform_0, window_bounds = array<i64: 8, 32>}, {pipeline_mode = #tpu.pipeline_mode<synchronous>, transform_indices = @transform_1, window_bounds = array<i64: 32, 128>}, {pipeline_mode = #tpu.pipeline_mode<synchronous>, transform_indices = @transform_2, window_bounds = array<i64: 1, 128>}, {pipeline_mode = #tpu.pipeline_mode<synchronous>, transform_indices = @transform_3, window_bounds = array<i64: 128, 128>}, {pipeline_mode = #tpu.pipeline_mode<synchronous>, transform_indices = @transform_4, window_bounds = array<i64: 1, 128>}, {pipeline_mode = #tpu.pipeline_mode<synchronous>, transform_indices = @transform_5, window_bounds = array<i64: 128, 8>}, {pipeline_mode = #tpu.pipeline_mode<synchronous>, transform_indices = @transform_6, window_bounds = array<i64: 1, 8>}, {transform_indices = @transform_7, window_bounds = array<i64: 8, 8>}]} {
    %c0 = arith.constant 0 : index
    %c0_0 = arith.constant 0 : index
    %0 = vector.load %arg1[%c0, %c0_0] : memref<8x32xf32, #tpu.memory_space<vmem>>, vector<8x32xf32>
    %c0_1 = arith.constant 0 : index
    %c0_2 = arith.constant 0 : index
    %1 = vector.load %arg2[%c0_1, %c0_2] : memref<32x128xf32, #tpu.memory_space<vmem>>, vector<32x128xf32>
    %cst = arith.constant dense<0.000000e+00> : vector<8x128xf32>
    %2 = tpu.matmul %0, %1, %cst {dimension_numbers = #tpu.dot_dimension_numbers<[1], [0], [0], [1], [0, 0, 1, 1], [], []>} : vector<8x32xf32>, vector<32x128xf32>, vector<8x128xf32> -> vector<8x128xf32>
    %c0_3 = arith.constant 0 : index
    %c0_4 = arith.constant 0 : index
    %3 = vector.load %arg3[%c0_3, %c0_4] : memref<1x128xf32, #tpu.memory_space<vmem>>, vector<1x128xf32>
    %4 = vector.broadcast %3 : vector<1x128xf32> to vector<8x128xf32>
    %5 = arith.addf %2, %4 : vector<8x128xf32>
    %cst_5 = arith.constant 0.000000e+00 : f32
    %6 = vector.broadcast %cst_5 : f32 to vector<8x128xf32>
    %7 = arith.maximumf %5, %6 : vector<8x128xf32>
    %c0_6 = arith.constant 0 : index
    %c0_7 = arith.constant 0 : index
    %8 = vector.load %arg4[%c0_6, %c0_7] : memref<128x128xf32, #tpu.memory_space<vmem>>, vector<128x128xf32>
    %cst_8 = arith.constant dense<0.000000e+00> : vector<8x128xf32>
    %9 = tpu.matmul %7, %8, %cst_8 {dimension_numbers = #tpu.dot_dimension_numbers<[1], [0], [0], [1], [0, 0, 1, 1], [], []>} : vector<8x128xf32>, vector<128x128xf32>, vector<8x128xf32> -> vector<8x128xf32>
    %c0_9 = arith.constant 0 : index
    %c0_10 = arith.constant 0 : index
    %10 = vector.load %arg5[%c0_9, %c0_10] : memref<1x128xf32, #tpu.memory_space<vmem>>, vector<1x128xf32>
    %11 = vector.broadcast %10 : vector<1x128xf32> to vector<8x128xf32>
    %12 = arith.addf %9, %11 : vector<8x128xf32>
    %cst_11 = arith.constant 0.000000e+00 : f32
    %13 = vector.broadcast %cst_11 : f32 to vector<8x128xf32>
    %14 = arith.maximumf %12, %13 : vector<8x128xf32>
    %c0_12 = arith.constant 0 : index
    %c0_13 = arith.constant 0 : index
    %15 = vector.load %arg6[%c0_12, %c0_13] : memref<128x8xf32, #tpu.memory_space<vmem>>, vector<128x8xf32>
    %cst_14 = arith.constant dense<0.000000e+00> : vector<8x8xf32>
    %16 = tpu.matmul %14, %15, %cst_14 {dimension_numbers = #tpu.dot_dimension_numbers<[1], [0], [0], [1], [0, 0, 1, 1], [], []>} : vector<8x128xf32>, vector<128x8xf32>, vector<8x8xf32> -> vector<8x8xf32>
    %c0_15 = arith.constant 0 : index
    %c0_16 = arith.constant 0 : index
    %17 = vector.load %arg7[%c0_15, %c0_16] : memref<1x8xf32, #tpu.memory_space<vmem>>, vector<1x8xf32>
    %18 = vector.broadcast %17 : vector<1x8xf32> to vector<8x8xf32>
    %19 = arith.addf %16, %18 : vector<8x8xf32>
    %c0_17 = arith.constant 0 : index
    %c0_18 = arith.constant 0 : index
    %20 = vector.load %arg8[%c0_17, %c0_18] : memref<8x8xf32, #tpu.memory_space<vmem>>, vector<8x8xf32>
    tpu.vector_store %arg8[%c0_17, %c0_18], %19 {strides = array<i32>} : memref<8x8xf32, #tpu.memory_space<vmem>>, vector<8x8xf32>,
    return
  }
  func.func @transform_0(%arg0: i32) -> (i32, i32) {
    %c0_i32 = arith.constant 0 : i32
    %c0_i32_0 = arith.constant 0 : i32
    return %arg0, %c0_i32 : i32, i32
  }
  func.func @transform_1(%arg0: i32) -> (i32, i32) {
    %c0_i32 = arith.constant 0 : i32
    %c0_i32_0 = arith.constant 0 : i32
    %c0_i32_1 = arith.constant 0 : i32
    return %c0_i32, %c0_i32_0 : i32, i32
  }
  func.func @transform_2(%arg0: i32) -> (i32, i32) {
    %c0_i32 = arith.constant 0 : i32
    %c0_i32_0 = arith.constant 0 : i32
    %c0_i32_1 = arith.constant 0 : i32
    return %c0_i32, %c0_i32_0 : i32, i32
  }
  func.func @transform_3(%arg0: i32) -> (i32, i32) {
    %c0_i32 = arith.constant 0 : i32
    %c0_i32_0 = arith.constant 0 : i32
    %c0_i32_1 = arith.constant 0 : i32
    return %c0_i32, %c0_i32_0 : i32, i32
  }
  func.func @transform_4(%arg0: i32) -> (i32, i32) {
    %c0_i32 = arith.constant 0 : i32
    %c0_i32_0 = arith.constant 0 : i32
    %c0_i32_1 = arith.constant 0 : i32
    return %c0_i32, %c0_i32_0 : i32, i32
  }
  func.func @transform_5(%arg0: i32) -> (i32, i32) {
    %c0_i32 = arith.constant 0 : i32
    %c0_i32_0 = arith.constant 0 : i32
    %c0_i32_1 = arith.constant 0 : i32
    return %c0_i32, %c0_i32_0 : i32, i32
  }
  func.func @transform_6(%arg0: i32) -> (i32, i32) {
    %c0_i32 = arith.constant 0 : i32
    %c0_i32_0 = arith.constant 0 : i32
    %c0_i32_1 = arith.constant 0 : i32
    return %c0_i32, %c0_i32_0 : i32, i32
  }
  func.func @transform_7(%arg0: i32) -> (i32, i32) {
    %c0_i32 = arith.constant 0 : i32
    %c0_i32_0 = arith.constant 0 : i32
    return %arg0, %c0_i32 : i32, i32
  }
}

</mosaic_0001>

<bundles_post_ra>
// kernel: tpu_custom_call.1
= control target key start
LH: loop header
LB: loop body
LE: loop exit
PB: predicated region body
PF: predicated region fallthrough
CT: control target
= control target key end

     0   :  { %12 = vsyncpa [#allocation3], 0  ;;  %s924_s0 = inlined_call_operand.hbm [shape: f32[16,32], index: 0, kind: input, shape index: {}]   ;;  %s925_s1 = inlined_call_operand.hbm [shape: f32[32,128], index: 1, kind: input, shape index: {}]   ;;  %s926_s2 = inlined_call_operand.vmem [shape: f32[1,128], index: 2, kind: input, shape index: {}]   ;;  %s927_s3 = inlined_call_operand.vmem [shape: f32[128,128], index: 3, kind: input, shape index: {}]   ;;  %s928_s4 = inlined_call_operand.vmem [shape: f32[1,128], index: 4, kind: input, shape index: {}]   ;;  %s929_s5 = inlined_call_operand.vmem [shape: f32[128,8], index: 5, kind: input, shape index: {}]   ;;  %s930_s6 = inlined_call_operand.vmem [shape: f32[1,8], index: 6, kind: input, shape index: {}]   ;;  %s931_s7 = inlined_call_operand.vmem [shape: f32[16,8], index: 7, kind: output, shape index: {}]  }
   0x1   :  { %14 = vsyncpa [#allocation3 + $0x1], 0 }
   0x2   :  { %15 = vsyncpa [#allocation5], 0  ;;  %s716_s24 = smov 0   ;;  %s718_s25 = smov 0  }
   0x3   :  { %s720_s26 = smov 0   ;;  %s722_s27 = smov 0  }
   0x4 LB: > { %s215_s30 = sshll.u32 %s925_s1, 4  ;;  %s738_s8 = sadd.s32 4294967295, %s671_s27   ;;  %s671_s27 = sphi %s722_s27, %s938_s27   ;;  %s667_s26 = sphi %s720_s26, %s937_s26   ;;  %s663_s25 = sphi %s718_s25, %s936_s25   ;;  %s659_s24 = sphi %s716_s24, %s935_s24   ;;  %s216_s30 = int_to_ptr.hbm [resolvable:$true] %s215_s30 }
   0x5   : > { %p506_p0 = scmp.ge.s32.totalorder %s671_s27, 1  ;;  %p42_p1 = scmp.eq.s32.totalorder %s738_s8, 0 }
   0x6   : > { %p204_p2 = scmp.lt.s32.totalorder %s671_s27, 3  ;;  %s673_s10 = smov [#allocation4]  }
   0x7   : > { %s217_s11 = sshll.u32 %s673_s10, 4  ;;  %s674_s12 = smov 128   ;;  %s218_s11 = int_to_ptr.vmem [resolvable:$true] %s217_s11 }
   0x8   : > { %p743_p3 = pnand %p506_p0, %p204_p2  ;;  %s675_s13 = smov 8  }
   0x9   : > { %s752_s14 = sadd.s32 1, %s671_s27   ;;  %s28_s16 = sadd.s32 1, %s667_s26 }
   0xa   : > { %p524_p4 = pneg %p743_p3  ;;  %s25_s15 = ssub.s32 %s671_s27, %s752_s14 }
   0xb   : > { %p26_p6 = scmp.eq.s32.totalorder %s25_s15, 0  ;;  %p35_p7 = scmp.ne.s32.totalorder %s667_s26, %s663_s25 }
   0xc   : > { %p525_p5 = pnand %p524_p4, %p42_p1  ;;  %p36_p8 = scmp.eq.s32.totalorder %s671_s27, 0 }
   0xd   : > { %p41_p9 = scmp.ne.s32.totalorder %s663_s25, %s659_s24  ;;  %p533_p12 = scmp.lt.s32.totalorder %s671_s27, 2 }
   0xe   : > { %527 = dma.hbm_to_vmem [thread:$0]  (!%p525_p5), %s216_s30, 512, %s218_s11, [#allocation5], %s674_s12, %s674_s12, %s675_s13  }
   0xf   : > { %s762_s17 = scalar_select %p26_p6, %s667_s26, %s28_s16  }
  0x10   : > { %p37_p10 = por %p36_p8, %p35_p7  ;;  %p766_p11 = por %p42_p1, %p41_p9 }
  0x11   : > { %s246_s19 = sand.u32 1, %s667_s26   ;;  %s510_s21 = sshll.u32 %s671_s27, 3 }
  0x12   : > { %s509_s20 = sshll.u32 %s246_s19, 3  ;;  %s254_s28 = scalar_lea.hbm %s924_s0, %s510_s21 }
  0x13   : > { %s250_s29 = scalar_lea.vmem [#allocation2], %s509_s20  ;;  %s256_s10 = sshll.u32 %s254_s28, 4  ;;  %s257_s10 = int_to_ptr.hbm [resolvable:$true] %s256_s10 }
  0x14   : > { %s258_s30 = sshll.u32 %s250_s29, 4  ;;  %p776_p13 = pnand %p533_p12, %p37_p10  ;;  %s259_s30 = int_to_ptr.vmem [resolvable:$true] %s258_s30 }
  0x15   : > { %s247_s11 = scalar_lea.sflag [#allocation3], %s246_s19  ;;  %s603_s12 = sshra.s32 %s257_s10, 4  ;;  %s604_s12 = int_to_ptr.hbm [resolvable:$true] %s603_s12 }
  0x16   : > { %s605_s13 = scalar_lea.hbm %s604_s12, 8  ;;  %p607_p2 = pneg %p776_p13 }
  0x17   : > { %p606_p0 = scmp.ne.s32.totalorder %s604_s12, %s605_s13  ;;  %s610_s16 = scalar_lea.hbm %s924_s0, 16 }
  0x18   : > { %p611_p6 = scmp.lt.s32.totalorder %s604_s12, %s924_s0  ;;  %p612_p7 = scmp.lt.s32.totalorder %s610_s16, %s605_s13 }
  0x19   : > { %p608_p4 = pnand %p607_p2, %p606_p0 }
  0x1a   : > { %p613_p8 = por %p612_p7, %p611_p6 }
  0x1b   : > { %p609_p5 = pneg %p608_p4 }
  0x1d   : > { %p614_p9 = pnand %p613_p8, %p609_p5 }
  0x1f   : > { %617 = shalt.err (!%p614_p9)
}
  0x20   : > { %531 = dma.hbm_to_vmem [thread:$0]  (!%p776_p13), %s257_s10, 128, %s259_s30, %s247_s11  }
  0x21   : > { %267 = sbr.rel (%p743_p3) target bundleno = 444 (0x1bc), region = 48  ;;  %s269_s19 = sand.u32 (!%p743_p3), 1, %s663_s25  }
  0x22   : > { %s512_s22 = sshll.u32 (!%p743_p3), %s269_s19, 3  ;;  %s270_s23 = scalar_lea.sflag (!%p743_p3), [#allocation3], %s269_s19 }
  0x23   : > { %s273_s28 = scalar_lea.vmem (!%p743_p3), [#allocation2], %s512_s22 }
  0x26   : > { %650 = dma.done.wait (%p766_p11), %s270_s23, 128  }
  0x27   : > { %652 = vsyncadd (%p766_p11), %s270_s23, 4294967168 }
  0x28   : > { %654 = dma.done.wait (%p42_p1), [#allocation5], 512  }
  0x29   : > { %656 = vsyncadd (%p42_p1), [#allocation5], 4294966784  ;;  %v317_v0 = vld [vmem:[#allocation4 + $0x18] sm:$0xff]  ;;  %v316_v1 = vld [vmem:[#allocation4 + $0x10] sm:$0xff]  ;;  %vm322_vm0 = vcmask 261120   ;;  %p309_p1 = scmp.lt.s32.totalorder %s738_s8, 1 }
  0x2a   : > { %338 = vmatpush.msra.mxu0 %v317_v0  ;;  %v362_v2 = vld [vmem:[%s927_s3 + $0x78] sm:$0xff]  ;;  %v361_v4 = vld [vmem:[%s927_s3 + $0x70] sm:$0xff]  ;;  %v360_v5 = vld [vmem:[%s927_s3 + $0x68] sm:$0xff]  ;;  %vm428_vm1 = vcmask 64512  }
  0x2b   : > { %v315_v3 = vld [vmem:[#allocation4 + $0x8] sm:$0xff]  ;;  %367 = vmatpush.msra.mxu1 %v362_v2  ;;  %v314_v6 = vld [vmem:[#allocation4] sm:$0xff]  ;;  %v313_v7 = vld [vmem:[%s273_s28] sm:$0xff]  ;;  %s940_s8 = smov (!%p309_p1, %s738_s8), 1 }
  0x2c   : > { %339 = vmatpush.msra.mxu0 %v316_v1  ;;  %v359_v8 = vld [vmem:[%s927_s3 + $0x60] sm:$0xff]  ;;  %v358_v9 = vld [vmem:[%s927_s3 + $0x58] sm:$0xff]  ;;  %v357_v10 = vld [vmem:[%s927_s3 + $0x50] sm:$0xff]  ;;  %s514_s19 = sshll.u32 %s940_s8, 3 }
  0x2d   : > { %368 = vmatpush.msra.mxu1 %v361_v4  ;;  %v356_v11 = vld [vmem:[%s927_s3 + $0x48] sm:$0xff]  ;;  %v355_v12 = vld [vmem:[%s927_s3 + $0x40] sm:$0xff]  ;;  %v354_v13 = vld [vmem:[%s927_s3 + $0x38] sm:$0xff]  ;;  %s312_s29 = scalar_lea.vmem %s931_s7, %s514_s19 }
  0x2e   : > { %340 = vmatpush.msra.mxu0 %v315_v3  ;;  %v353_v14 = vld [vmem:[%s927_s3 + $0x30] sm:$0xff]  ;;  %v352_v15 = vld [vmem:[%s927_s3 + $0x28] sm:$0xff]  ;;  %v351_v16 = vld [vmem:[%s927_s3 + $0x20] sm:$0xff] }
  0x2f   : > { %369 = vmatpush.msra.mxu1 %v360_v5  ;;  %v350_v17 = vld [vmem:[%s927_s3 + $0x18] sm:$0xff]  ;;  %v349_v18 = vld [vmem:[%s927_s3 + $0x10] sm:$0xff]  ;;  %v348_v19 = vld [vmem:[%s927_s3 + $0x8] sm:$0xff] }
  0x30   : > { %341 = vmatpush.msra.mxu0 %v314_v6  ;;  %v347_v20 = vld [vmem:[%s927_s3] sm:$0xff]  ;;  %v403_v21 = vld [vmem:[%s929_s5 + $0x78] sm:$0xff]  ;;  %v402_v22 = vld [vmem:[%s929_s5 + $0x70] sm:$0xff] }
  0x31   : > { %515 = vmatmul.msk.f32.vlgmr.msra.gmra.mxu0 %vm322_vm0, %v313_v7  ;;  %370 = vmatpush.msra.mxu1 %v359_v8  ;;  %v401_v23 = vld [vmem:[%s929_s5 + $0x68] sm:$0xff]  ;;  %v400_v24 = vld [vmem:[%s929_s5 + $0x60] sm:$0xff]  ;;  %v399_v25 = vld [vmem:[%s929_s5 + $0x58] sm:$0xff] }
  0x32   : > { %408 = vmatpush.msra.mxu2 %v403_v21  ;;  %v398_v26 = vld [vmem:[%s929_s5 + $0x50] sm:$0xff]  ;;  %v397_v27 = vld [vmem:[%s929_s5 + $0x48] sm:$0xff]  ;;  %v396_v28 = vld [vmem:[%s929_s5 + $0x40] sm:$0xff] }
  0x33   : > { %371 = vmatpush.msra.mxu1 %v358_v9  ;;  %v395_v29 = vld [vmem:[%s929_s5 + $0x38] sm:$0xff]  ;;  %v394_v30 = vld [vmem:[%s929_s5 + $0x30] sm:$0xff]  ;;  %v393_v31 = vld [vmem:[%s929_s5 + $0x28] sm:$0xff] }
  0x34   : > { %409 = vmatpush.msra.mxu2 %v402_v22  ;;  %v392_v32 = vld [vmem:[%s929_s5 + $0x20] sm:$0xff]  ;;  %v391_v33 = vld [vmem:[%s929_s5 + $0x18] sm:$0xff]  ;;  %v390_v38 = vld [vmem:[%s929_s5 + $0x10] sm:$0xff] }
  0x35   : > { %372 = vmatpush.msra.mxu1 %v357_v10  ;;  %v570_v34 = vld [vmem:[%s926_s2] ss:$0 sm:$0xff]  ;;  %v389_v39 = vld [vmem:[%s929_s5 + $0x8] sm:$0xff] }
  0x36   : > { %410 = vmatpush.msra.mxu2 %v401_v23  ;;  %v388_v40 = vld [vmem:[%s929_s5] sm:$0xff] }
  0x37   : > { %373 = vmatpush.msra.mxu1 %v356_v11  ;;  %v571_v41 = vld [vmem:[%s928_s4] ss:$0 sm:$0xff] }
  0x38   : > { %411 = vmatpush.msra.mxu2 %v400_v24  ;;  %v572_v45 = vld [vmem:[%s930_s6] ss:$0 sm:$0xff] }
  0x39   : > { %374 = vmatpush.msra.mxu1 %v355_v12 }
  0x3a   : > { %412 = vmatpush.msra.mxu2 %v399_v25 }
  0x3b   : > { %375 = vmatpush.msra.mxu1 %v354_v13 }
  0x3c   : > { %413 = vmatpush.msra.mxu2 %v398_v26 }
  0x3d   : > { %376 = vmatpush.msra.mxu1 %v353_v14 }
  0x3e   : > { %414 = vmatpush.msra.mxu2 %v397_v27 }
  0x3f   : > { %377 = vmatpush.msra.mxu1 %v352_v15 }
  0x40   : > { %415 = vmatpush.msra.mxu2 %v396_v28 }
  0x41   : > { %378 = vmatpush.msra.mxu1 %v351_v16 }
  0x42   : > { %416 = vmatpush.msra.mxu2 %v395_v29 }
  0x43   : > { %379 = vmatpush.msra.mxu1 %v350_v17 }
  0x44   : > { %417 = vmatpush.msra.mxu2 %v394_v30 }
  0x45   : > { %380 = vmatpush.msra.mxu1 %v349_v18 }
  0x46   : > { %418 = vmatpush.msra.mxu2 %v393_v31 }
  0x47   : > { %381 = vmatpush.msra.mxu1 %v348_v19 }
  0x48   : > { %419 = vmatpush.msra.mxu2 %v392_v32 }
  0x49   : > { %382 = vmatpush.msra.mxu1 %v347_v20 }
  0x4a   : > { %420 = vmatpush.msra.mxu2 %v391_v33 }
  0x4c   : > { %421 = vmatpush.msra.mxu2 %v390_v38 }
  0x4e   : > { %422 = vmatpush.msra.mxu2 %v389_v39 }
  0x50   : > { %423 = vmatpush.msra.mxu2 %v388_v40 }
  0xae   : > { %v343_v35 = vpop.f32.mrf.mxu0 }
  0xaf   : > { %v344_v36 = vadd.f32 %v570_v34, %v343_v35 }
  0xb1   : > { %v346_v37 = vmax.f32 %v344_v36, 0.0 }
  0xb3   : > { %383 = vmatmul.f32.vlgmr.msra.gmra.mxu1 %v346_v37 }
 0x130   : > { %v384_v42 = vpop.f32.mrf.mxu1 }
 0x131   : > { %v385_v43 = vadd.f32 %v571_v41, %v384_v42 }
 0x133   : > { %v387_v44 = vmax.f32 %v385_v43, 0.0 }
 0x135   : > { %424 = vmatmul.f32.vlgmr.msra.gmra.mxu2 %v387_v44 }
 0x1b8   : > { %v425_v46 = vpop.f32.mrf.mxu2 }
 0x1b9   : > { %v426_v47 = vadd.f32 %v572_v45, %v425_v46 }
 0x1bb   : > { %429 = vst.msk [vmem:[%s312_s29] sm:$0xff] %vm428_vm1, %v426_v47 }
 0x1bc PF: > { %p18_p3 = scmp.ge.s32.totalorder %s752_s14, 4   ;;  %s935_s24 = smov %s663_s25 }
 0x1bd   : > { %s936_s25 = smov %s667_s26  ;;  %s937_s26 = smov %s762_s17 }
 0x1be   : > { %s938_s27 = smov %s752_s14  ;;  %20 = sbr.rel (!%p18_p3) target bundleno = 4 (0x4), region = 92 }
 0x1c3   :  { %449 = vsyncpa [#allocation3], 1 }
 0x1c4   :  { %451 = vsyncpa [#allocation3 + $0x1], 1 }
 0x1c5   :  { %452 = vsyncpa [#allocation5], 1 }

</bundles_post_ra>
